<compile_context>
chip_gen: v6e
topology: v6e:2x2x1
jax: 0.10.0
libtpu: 0.0.40
codegen_flags: <defaults>
</compile_context>

<pallas_src>
import jax
import jax.numpy as jnp
from jax.experimental import pallas as pl
from jax.experimental.pallas import tpu as pltpu

LATENT = 16
HIDDEN = 128
OUTPUT = 28 * 28          # 784 true output width
OUTPUT_PAD = 896          # 7 * 128 -> lane-dense output stores
TB_MAX = 2048             # batch tile; double-buffered I/O fits v7x VMEM


def generator_kernel(x_ref, w1_ref, b1_ref, w2_ref, b2_ref, o_ref):
    # hidden = relu(x @ W1 + b1)
    h = jnp.dot(x_ref[...], w1_ref[...], preferred_element_type=jnp.float32)
    h = jnp.maximum(h + b1_ref[...], 0.0)        # (TB, H) + (1, H) broadcast
    # out = sigmoid(h @ W2 + b2)   (W2/b2 zero-padded to OUTPUT_PAD columns)
    y = jnp.dot(h, w2_ref[...], preferred_element_type=jnp.float32)
    y = y + b2_ref[...]                          # (TB, Opad) + (1, Opad)
    o_ref[...] = jax.nn.sigmoid(y)


def _round_up(n, m):
    return ((n + m - 1) // m) * m


def generator_forward(x, w1, b1, w2, b2):
    """x: (B, LATENT) f32; w2/b2 are padded to OUTPUT_PAD columns.

    Returns (B, OUTPUT) f32.
    """
    B = x.shape[0]
    tb = min(TB_MAX, _round_up(B, 8))
    b_pad = _round_up(B, tb)
    if b_pad != B:
        x = jnp.pad(x, ((0, b_pad - B), (0, 0)))

    out = pl.pallas_call(
        generator_kernel,
        out_shape=jax.ShapeDtypeStruct((b_pad, OUTPUT_PAD), jnp.float32),
        grid=(b_pad // tb,),
        in_specs=[
            pl.BlockSpec((tb, LATENT), lambda i: (i, 0)),         # x tile
            pl.BlockSpec((LATENT, HIDDEN), lambda i: (0, 0)),     # W1 resident
            pl.BlockSpec((1, HIDDEN), lambda i: (0, 0)),          # b1 resident
            pl.BlockSpec((HIDDEN, OUTPUT_PAD), lambda i: (0, 0)), # W2 resident
            pl.BlockSpec((1, OUTPUT_PAD), lambda i: (0, 0)),      # b2 resident
        ],
        out_specs=pl.BlockSpec((tb, OUTPUT_PAD), lambda i: (i, 0)),
        compiler_params=pltpu.CompilerParams(
            dimension_semantics=("parallel",),   # shard batch tiles over TCs
            vmem_limit_bytes=64 << 20,
        ),
    )(x, w1, b1, w2, b2)
    return out[:B, :OUTPUT]


def init_params(key):
    """Deterministic init (mimics nn.Linear uniform fan-in init).

    Weights stored (in, out) -- transposed vs PyTorch's (out, in) -- so the
    kernel does plain no-transpose MXU matmuls. W2/b2 are zero-padded from
    OUTPUT (784) to OUTPUT_PAD (896) columns.
    """
    k1, k2, k3, k4 = jax.random.split(key, 4)
    bound1 = 1.0 / (LATENT ** 0.5)
    bound2 = 1.0 / (HIDDEN ** 0.5)
    w1 = jax.random.uniform(k1, (LATENT, HIDDEN), jnp.float32, -bound1, bound1)
    b1 = jax.random.uniform(k2, (1, HIDDEN), jnp.float32, -bound1, bound1)
    w2 = jax.random.uniform(k3, (HIDDEN, OUTPUT), jnp.float32, -bound2, bound2)
    b2 = jax.random.uniform(k4, (1, OUTPUT), jnp.float32, -bound2, bound2)
    # zero-pad output columns 784 -> 896 (padded lanes never affect the slice)
    w2p = jnp.pad(w2, ((0, 0), (0, OUTPUT_PAD - OUTPUT)))
    b2p = jnp.pad(b2, ((0, 0), (0, OUTPUT_PAD - OUTPUT)))
    return w1, b1, w2p, b2p


def reference_forward(x, w1, b1, w2p, b2p):
    h = jnp.maximum(x @ w1 + b1, 0.0)
    y = jax.nn.sigmoid(h @ w2p + b2p)
    return y[:, :OUTPUT]


if __name__ == "__main__":
    key = jax.random.PRNGKey(0)
    kx, kp = jax.random.split(key)

    B = 8  # small batch of latent vectors
    x = jax.random.normal(kx, (B, LATENT), jnp.float32)
    w1, b1, w2, b2 = init_params(kp)

    out = generator_forward(x, w1, b1, w2, b2)
    out = jax.block_until_ready(out)

    ref = reference_forward(x, w1, b1, w2, b2)
    assert out.shape == (B, OUTPUT)
    assert jnp.allclose(out, ref, atol=1e-5, rtol=1e-5)

    print("KERNEL_OK")
</pallas_src>

<mosaic_0001>
module attributes {stable_mosaic.version = 11 : i64} {
  func.func @generator_kernel(%arg0: i32, %arg1: memref<8x16xf32, #tpu.memory_space<vmem>>, %arg2: memref<16x128xf32, #tpu.memory_space<vmem>>, %arg3: memref<1x128xf32, #tpu.memory_space<vmem>>, %arg4: memref<128x896xf32, #tpu.memory_space<vmem>>, %arg5: memref<1x896xf32, #tpu.memory_space<vmem>>, %arg6: memref<8x896xf32, #tpu.memory_space<vmem>>) attributes {dimension_semantics = [#tpu.dimension_semantics<parallel>], iteration_bounds = array<i64: 1>, scalar_prefetch = 0 : i64, scratch_operands = 0 : i64, tpu.core_type = #tpu.core_type<tc>, window_params = [{transform_indices = @transform_0, window_bounds = array<i64: 8, 16>}, {pipeline_mode = #tpu.pipeline_mode<synchronous>, transform_indices = @transform_1, window_bounds = array<i64: 16, 128>}, {pipeline_mode = #tpu.pipeline_mode<synchronous>, transform_indices = @transform_2, window_bounds = array<i64: 1, 128>}, {pipeline_mode = #tpu.pipeline_mode<synchronous>, transform_indices = @transform_3, window_bounds = array<i64: 128, 896>}, {pipeline_mode = #tpu.pipeline_mode<synchronous>, transform_indices = @transform_4, window_bounds = array<i64: 1, 896>}, {transform_indices = @transform_5, window_bounds = array<i64: 8, 896>}]} {
    %c0 = arith.constant 0 : index
    %c0_0 = arith.constant 0 : index
    %0 = vector.load %arg1[%c0, %c0_0] : memref<8x16xf32, #tpu.memory_space<vmem>>, vector<8x16xf32>
    %c0_1 = arith.constant 0 : index
    %c0_2 = arith.constant 0 : index
    %1 = vector.load %arg2[%c0_1, %c0_2] : memref<16x128xf32, #tpu.memory_space<vmem>>, vector<16x128xf32>
    %cst = arith.constant dense<0.000000e+00> : vector<8x128xf32>
    %2 = tpu.matmul %0, %1, %cst {dimension_numbers = #tpu.dot_dimension_numbers<[1], [0], [0], [1], [0, 0, 1, 1], [], []>} : vector<8x16xf32>, vector<16x128xf32>, vector<8x128xf32> -> vector<8x128xf32>
    %c0_3 = arith.constant 0 : index
    %c0_4 = arith.constant 0 : index
    %3 = vector.load %arg3[%c0_3, %c0_4] : memref<1x128xf32, #tpu.memory_space<vmem>>, vector<1x128xf32>
    %4 = vector.broadcast %3 : vector<1x128xf32> to vector<8x128xf32>
    %5 = arith.addf %2, %4 : vector<8x128xf32>
    %cst_5 = arith.constant 0.000000e+00 : f32
    %6 = vector.broadcast %cst_5 : f32 to vector<8x128xf32>
    %7 = arith.maximumf %5, %6 : vector<8x128xf32>
    %c0_6 = arith.constant 0 : index
    %c0_7 = arith.constant 0 : index
    %8 = vector.load %arg4[%c0_6, %c0_7] : memref<128x896xf32, #tpu.memory_space<vmem>>, vector<128x896xf32>
    %cst_8 = arith.constant dense<0.000000e+00> : vector<8x896xf32>
    %9 = tpu.matmul %7, %8, %cst_8 {dimension_numbers = #tpu.dot_dimension_numbers<[1], [0], [0], [1], [0, 0, 1, 1], [], []>} : vector<8x128xf32>, vector<128x896xf32>, vector<8x896xf32> -> vector<8x896xf32>
    %c0_9 = arith.constant 0 : index
    %c0_10 = arith.constant 0 : index
    %10 = vector.load %arg5[%c0_9, %c0_10] : memref<1x896xf32, #tpu.memory_space<vmem>>, vector<1x896xf32>
    %11 = vector.broadcast %10 : vector<1x896xf32> to vector<8x896xf32>
    %12 = arith.addf %9, %11 : vector<8x896xf32>
    %13 = arith.negf %12 : vector<8x896xf32>
    %14 = math.exp %13 : vector<8x896xf32>
    %cst_11 = arith.constant 1.000000e+00 : f32
    %15 = vector.broadcast %cst_11 : f32 to vector<8x896xf32>
    %16 = arith.addf %15, %14 : vector<8x896xf32>
    %17 = arith.divf %15, %16 : vector<8x896xf32>
    %c0_12 = arith.constant 0 : index
    %c0_13 = arith.constant 0 : index
    %18 = vector.load %arg6[%c0_12, %c0_13] : memref<8x896xf32, #tpu.memory_space<vmem>>, vector<8x896xf32>
    tpu.vector_store %arg6[%c0_12, %c0_13], %17 {strides = array<i32>} : memref<8x896xf32, #tpu.memory_space<vmem>>, vector<8x896xf32>,
    return
  }
  func.func @transform_0(%arg0: i32) -> (i32, i32) {
    %c0_i32 = arith.constant 0 : i32
    %c0_i32_0 = arith.constant 0 : i32
    return %arg0, %c0_i32 : i32, i32
  }
  func.func @transform_1(%arg0: i32) -> (i32, i32) {
    %c0_i32 = arith.constant 0 : i32
    %c0_i32_0 = arith.constant 0 : i32
    %c0_i32_1 = arith.constant 0 : i32
    return %c0_i32, %c0_i32_0 : i32, i32
  }
  func.func @transform_2(%arg0: i32) -> (i32, i32) {
    %c0_i32 = arith.constant 0 : i32
    %c0_i32_0 = arith.constant 0 : i32
    %c0_i32_1 = arith.constant 0 : i32
    return %c0_i32, %c0_i32_0 : i32, i32
  }
  func.func @transform_3(%arg0: i32) -> (i32, i32) {
    %c0_i32 = arith.constant 0 : i32
    %c0_i32_0 = arith.constant 0 : i32
    %c0_i32_1 = arith.constant 0 : i32
    return %c0_i32, %c0_i32_0 : i32, i32
  }
  func.func @transform_4(%arg0: i32) -> (i32, i32) {
    %c0_i32 = arith.constant 0 : i32
    %c0_i32_0 = arith.constant 0 : i32
    %c0_i32_1 = arith.constant 0 : i32
    return %c0_i32, %c0_i32_0 : i32, i32
  }
  func.func @transform_5(%arg0: i32) -> (i32, i32) {
    %c0_i32 = arith.constant 0 : i32
    %c0_i32_0 = arith.constant 0 : i32
    return %arg0, %c0_i32 : i32, i32
  }
}

</mosaic_0001>

<bundles_post_ra>
// kernel: tpu_custom_call.1
= control target key start
LH: loop header
LB: loop body
LE: loop exit
PB: predicated region body
PF: predicated region fallthrough
CT: control target
= control target key end

     0   :  { %10 = vsyncpa [#allocation3], 0  ;;  %s963_s0 = inlined_call_operand.hbm [shape: f32[8,16], index: 0, kind: input, shape index: {}]   ;;  %s964_s1 = inlined_call_operand.hbm [shape: f32[16,128], index: 1, kind: input, shape index: {}]   ;;  %s965_s2 = inlined_call_operand.hbm [shape: f32[1,128], index: 2, kind: input, shape index: {}]   ;;  %s966_s3 = inlined_call_operand.hbm [shape: f32[128,896], index: 3, kind: input, shape index: {}]   ;;  %s967_s4 = inlined_call_operand.vmem [shape: f32[1,896], index: 4, kind: input, shape index: {}]   ;;  %s968_s5 = inlined_call_operand.hbm [shape: f32[8,896], index: 5, kind: output, shape index: {}]  }
   0x1   :  { %11 = vsyncpa [#allocation6], 0 }
   0x2   :  { %12 = vsyncpa [#allocation9], 0 }
   0x3   :  { %13 = vsyncpa [#allocation4], 0  ;;  %s873_s18 = smov [#allocation5]  }
   0x4   :  { %s29_s19 = sshll.u32 %s873_s18, 4  ;;  %s30_s19 = int_to_ptr.vmem [resolvable:$true] %s29_s19 }
   0x5   :  { %s773_s20 = scalar_lea.vmem %s30_s19, 256  ;;  %p778_p1 = scmp.lt.s32.totalorder %s30_s19, %s30_s19 }
   0x6   :  { %p774_p0 = scmp.ne.s32.totalorder %s30_s19, %s773_s20  ;;  %p779_p2 = scmp.lt.s32.totalorder %s773_s20, %s773_s20 }
   0x8   :  { %p780_p3 = por %p779_p2, %p778_p1 }
   0xa   :  { %p781_p4 = pnand %p780_p3, %p774_p0 }
   0xc   :  { %784 = shalt.err (!%p781_p4)
}
   0xd   :  { %s874_s21 = smov 128   ;;  %s875_s22 = smov 8  }
   0xe   :  { %35 = dma.hbm_to_vmem [thread:$0]  %s964_s1, 256, %s30_s19, [#allocation6], %s874_s21, %s874_s21, %s875_s22  }
   0xf   :  { %s876_s25 = smov [#allocation2]   ;;  %s877_s27 = smov [#allocation7]  }
  0x10   :  { %s20_s26 = sshll.u32 %s876_s25, 4  ;;  %s42_s28 = sshll.u32 %s877_s27, 4  ;;  %s21_s26 = int_to_ptr.vmem [resolvable:$true] %s20_s26  ;;  %s43_s28 = int_to_ptr.vmem [resolvable:$true] %s42_s28 }
  0x11   :  { %s793_s29 = scalar_lea.vmem %s21_s26, 128  ;;  %p798_p6 = scmp.lt.s32.totalorder %s21_s26, %s21_s26 }
  0x12   :  { %p794_p5 = scmp.ne.s32.totalorder %s21_s26, %s793_s29  ;;  %p799_p7 = scmp.lt.s32.totalorder %s793_s29, %s793_s29 }
  0x14   :  { %p800_p8 = por %p799_p7, %p798_p6 }
  0x16   :  { %p801_p9 = pnand %p800_p8, %p794_p5 }
  0x18   :  { %804 = shalt.err (!%p801_p9)
}
  0x19   :  { %23 = dma.hbm_to_vmem [thread:$0]  %s963_s0, 128, %s21_s26, [#allocation3]  }
  0x1a   :  { %s813_s7 = scalar_lea.vmem %s43_s28, 16  ;;  %s817_s1 = scalar_lea.vmem %s43_s28, 32 }
  0x1b   :  { %p814_p10 = scmp.ne.s32.totalorder %s43_s28, %s813_s7  ;;  %p818_p11 = scmp.lt.s32.totalorder %s43_s28, %s43_s28 }
  0x1c   :  { %p819_p12 = scmp.lt.s32.totalorder %s817_s1, %s813_s7 }
  0x1e   :  { %p820_p13 = por %p819_p12, %p818_p11 }
  0x20   :  { %p821_p0 = pnand %p820_p13, %p814_p10 }
  0x22   :  { %824 = shalt.err (!%p821_p0)
}
  0x23   :  { %45 = dma.hbm_to_vmem [thread:$0]  %s965_s2, 16, %s43_s28, [#allocation6]  }
  0x24   :  { %s878_s10 = smov [#allocation8]  }
  0x25   :  { %s51_s11 = sshll.u32 %s878_s10, 4  ;;  %s52_s11 = int_to_ptr.vmem [resolvable:$true] %s51_s11 }
  0x26   :  { %s833_s12 = scalar_lea.vmem %s52_s11, 14336  ;;  %p838_p2 = scmp.lt.s32.totalorder %s52_s11, %s52_s11 }
  0x27   :  { %p834_p1 = scmp.ne.s32.totalorder %s52_s11, %s833_s12  ;;  %p839_p3 = scmp.lt.s32.totalorder %s833_s12, %s833_s12 }
  0x29   :  { %p840_p4 = por %p839_p3, %p838_p2 }
  0x2b   :  { %p841_p5 = pnand %p840_p4, %p834_p1 }
  0x2d   :  { %844 = shalt.err (!%p841_p5)
}
  0x2e   :  { %s879_s0 = smov 896   ;;  %s880_s13 = smov 56  }
  0x2f   :  { %57 = dma.hbm_to_vmem [thread:$0]  %s966_s3, 14336, %s52_s11, [#allocation9], %s879_s0, %s879_s0, %s880_s13  }
  0x30   :  { %865 = dma.done.wait [#allocation3], 128  }
  0x31   :  { %866 = vsyncadd [#allocation3], 4294967168 }
  0x32   :  { %867 = dma.done.wait [#allocation6], 272  }
  0x33   :  { %868 = vsyncadd [#allocation6], 4294967024 }
  0x34   :  { %869 = dma.done.wait [#allocation9], 14336  }
  0x35   :  { %870 = vsyncadd [#allocation9], 4294952960  ;;  %v881_v0 = vmov 0.0   ;;  %vm882_vm0 = vmmov 0   ;;  %v74_v1 = vld [vmem:[#allocation5 + $0x8] sm:$0xff]  ;;  %v73_v2 = vld [vmem:[#allocation5] sm:$0xff] }
  0x36   :  { %684 = vmatprep.subr.mxu0 %v881_v0  ;;  %688 = vmatprep.mubr.msk.f32.mxu0 %vm882_vm0, %v881_v0  ;;  %v72_v3 = vld [vmem:[#allocation2] sm:$0xff]  ;;  %vm82_vm1 = vcmask 130048   ;;  %v263_v4 = vld [vmem:[#allocation8 + $0x350] sm:$0xff]  ;;  %v264_v7 = vld [vmem:[#allocation8 + $0x358] sm:$0xff] }
  0x37   :  { %370 = vmatprep.mubr.f32.mxu1 %v881_v0  ;;  %685 = vmatpush3.msra.mxu0 %v74_v1  ;;  %v265_v5 = vld [vmem:[#allocation8 + $0x360] sm:$0xff]  ;;  %v262_v6 = vld [vmem:[#allocation8 + $0x348] sm:$0xff]  ;;  %v256_v8 = vld [vmem:[#allocation8 + $0x318] sm:$0xff] }
  0x38   :  { %686 = vmatprep.subr.mxu0 %v881_v0  ;;  %306 = vmatprep.subr.mxu1 %v263_v4  ;;  %v258_v9 = vld [vmem:[#allocation8 + $0x328] sm:$0xff]  ;;  %v255_v10 = vld [vmem:[#allocation8 + $0x310] sm:$0xff]  ;;  %v257_v11 = vld [vmem:[#allocation8 + $0x320] sm:$0xff] }
  0x39   :  { %687 = vmatpush3.msra.mxu0 %v73_v2  ;;  %307 = vmatpush1.msra.mxu1 %v262_v6  ;;  %v249_v12 = vld [vmem:[#allocation8 + $0x2e0] sm:$0xff]  ;;  %v251_v13 = vld [vmem:[#allocation8 + $0x2f0] sm:$0xff]  ;;  %v248_v14 = vld [vmem:[#allocation8 + $0x2d8] sm:$0xff] }
  0x3a   :  { %689 = vmatmul.mubr.msk.f32.vlgmr.msra.gmra.mxu0 %vm82_vm1, %v72_v3  ;;  %377 = vmatprep.subr.mxu0 %v265_v5  ;;  %v250_v15 = vld [vmem:[#allocation8 + $0x2e8] sm:$0xff]  ;;  %v244_v17 = vld [vmem:[#allocation8 + $0x2b8] sm:$0xff]  ;;  %v241_v18 = vld [vmem:[#allocation8 + $0x2a0] sm:$0xff] }
  0x3b   :  { %378 = vmatpush1.msra.mxu0 %v264_v7  ;;  %308 = vmatprep.subr.mxu1 %v256_v8  ;;  %v242_v16 = vld [vmem:[#allocation8 + $0x2a8] sm:$0xff]  ;;  %v243_v19 = vld [vmem:[#allocation8 + $0x2b0] sm:$0xff]  ;;  %v237_v21 = vld [vmem:[#allocation8 + $0x280] sm:$0xff] }
  0x3c   :  { %379 = vmatprep.subr.mxu0 %v258_v9  ;;  %309 = vmatpush1.msra.mxu1 %v255_v10  ;;  %v235_v20 = vld [vmem:[#allocation8 + $0x270] sm:$0xff]  ;;  %v234_v22 = vld [vmem:[#allocation8 + $0x268] sm:$0xff]  ;;  %v236_v23 = vld [vmem:[#allocation8 + $0x278] sm:$0xff] }
  0x3d   :  { %380 = vmatpush1.msra.mxu0 %v257_v11  ;;  %310 = vmatprep.subr.mxu1 %v249_v12  ;;  %v228_v24 = vld [vmem:[#allocation8 + $0x238] sm:$0xff]  ;;  %v230_v25 = vld [vmem:[#allocation8 + $0x248] sm:$0xff]  ;;  %v227_v26 = vld [vmem:[#allocation8 + $0x230] sm:$0xff] }
  0x3e   :  { %381 = vmatprep.subr.mxu0 %v251_v13  ;;  %311 = vmatpush1.msra.mxu1 %v248_v14  ;;  %v229_v27 = vld [vmem:[#allocation8 + $0x240] sm:$0xff]  ;;  %v223_v29 = vld [vmem:[#allocation8 + $0x210] sm:$0xff]  ;;  %v220_v30 = vld [vmem:[#allocation8 + $0x1f8] sm:$0xff] }
  0x3f   :  { %382 = vmatpush1.msra.mxu0 %v250_v15  ;;  %312 = vmatprep.subr.mxu1 %v242_v16  ;;  %v221_v28 = vld [vmem:[#allocation8 + $0x200] sm:$0xff]  ;;  %v222_v31 = vld [vmem:[#allocation8 + $0x208] sm:$0xff]  ;;  %v216_v33 = vld [vmem:[#allocation8 + $0x1d8] sm:$0xff] }
  0x40   :  { %383 = vmatprep.subr.mxu0 %v244_v17  ;;  %313 = vmatpush1.msra.mxu1 %v241_v18  ;;  %v214_v32 = vld [vmem:[#allocation8 + $0x1c8] sm:$0xff]  ;;  %v213_v34 = vld [vmem:[#allocation8 + $0x1c0] sm:$0xff]  ;;  %v215_v35 = vld [vmem:[#allocation8 + $0x1d0] sm:$0xff] }
  0x41   :  { %384 = vmatpush1.msra.mxu0 %v243_v19  ;;  %314 = vmatprep.subr.mxu1 %v235_v20  ;;  %v207_v36 = vld [vmem:[#allocation8 + $0x190] sm:$0xff]  ;;  %v209_v37 = vld [vmem:[#allocation8 + $0x1a0] sm:$0xff]  ;;  %v206_v38 = vld [vmem:[#allocation8 + $0x188] sm:$0xff] }
  0x42   :  { %385 = vmatprep.subr.mxu0 %v237_v21  ;;  %315 = vmatpush1.msra.mxu1 %v234_v22  ;;  %v208_v39 = vld [vmem:[#allocation8 + $0x198] sm:$0xff]  ;;  %v202_v41 = vld [vmem:[#allocation8 + $0x168] sm:$0xff]  ;;  %v199_v42 = vld [vmem:[#allocation8 + $0x150] sm:$0xff] }
  0x43   :  { %386 = vmatpush1.msra.mxu0 %v236_v23  ;;  %316 = vmatprep.subr.mxu1 %v228_v24  ;;  %v200_v40 = vld [vmem:[#allocation8 + $0x158] sm:$0xff]  ;;  %v201_v43 = vld [vmem:[#allocation8 + $0x160] sm:$0xff]  ;;  %v195_v45 = vld [vmem:[#allocation8 + $0x130] sm:$0xff] }
  0x44   :  { %387 = vmatprep.subr.mxu0 %v230_v25  ;;  %317 = vmatpush1.msra.mxu1 %v227_v26  ;;  %v193_v44 = vld [vmem:[#allocation8 + $0x120] sm:$0xff]  ;;  %v192_v46 = vld [vmem:[#allocation8 + $0x118] sm:$0xff]  ;;  %v194_v47 = vld [vmem:[#allocation8 + $0x128] sm:$0xff] }
  0x45   :  { %388 = vmatpush1.msra.mxu0 %v229_v27  ;;  %318 = vmatprep.subr.mxu1 %v221_v28  ;;  %v186_v48 = vld [vmem:[#allocation8 + $0xe8] sm:$0xff]  ;;  %v188_v49 = vld [vmem:[#allocation8 + $0xf8] sm:$0xff]  ;;  %v185_v50 = vld [vmem:[#allocation8 + $0xe0] sm:$0xff] }
  0x46   :  { %389 = vmatprep.subr.mxu0 %v223_v29  ;;  %319 = vmatpush1.msra.mxu1 %v220_v30  ;;  %v187_v51 = vld [vmem:[#allocation8 + $0xf0] sm:$0xff]  ;;  %v181_v53 = vld [vmem:[#allocation8 + $0xc0] sm:$0xff]  ;;  %v178_v54 = vld [vmem:[#allocation8 + $0xa8] sm:$0xff] }
  0x47   :  { %390 = vmatpush1.msra.mxu0 %v222_v31  ;;  %320 = vmatprep.subr.mxu1 %v214_v32  ;;  %v179_v52 = vld [vmem:[#allocation8 + $0xb0] sm:$0xff]  ;;  %v180_v55 = vld [vmem:[#allocation8 + $0xb8] sm:$0xff]  ;;  %v174_v57 = vld [vmem:[#allocation8 + $0x88] sm:$0xff] }
  0x48   :  { %391 = vmatprep.subr.mxu0 %v216_v33  ;;  %321 = vmatpush1.msra.mxu1 %v213_v34  ;;  %v172_v56 = vld [vmem:[#allocation8 + $0x78] sm:$0xff]  ;;  %v171_v58 = vld [vmem:[#allocation8 + $0x70] sm:$0xff]  ;;  %v173_v59 = vld [vmem:[#allocation8 + $0x80] sm:$0xff] }
  0x49   :  { %392 = vmatpush1.msra.mxu0 %v215_v35  ;;  %322 = vmatprep.subr.mxu1 %v207_v36  ;;  %v165_v60 = vld [vmem:[#allocation8 + $0x40] sm:$0xff]  ;;  %v167_v61 = vld [vmem:[#allocation8 + $0x50] sm:$0xff]  ;;  %v164_v62 = vld [vmem:[#allocation8 + $0x38] sm:$0xff] }
  0x4a   :  { %393 = vmatprep.subr.mxu0 %v209_v37  ;;  %323 = vmatpush1.msra.mxu1 %v206_v38  ;;  %v166_v63 = vld [vmem:[#allocation8 + $0x48] sm:$0xff]  ;;  %v160_v2 = vld [vmem:[#allocation8 + $0x18] sm:$0xff]  ;;  %v157_v3 = vld [vmem:[#allocation8] sm:$0xff] }
  0x4b   :  { %394 = vmatpush1.msra.mxu0 %v208_v39  ;;  %324 = vmatprep.subr.mxu1 %v200_v40  ;;  %v158_v1 = vld [vmem:[#allocation8 + $0x8] sm:$0xff]  ;;  %v159_v4 = vld [vmem:[#allocation8 + $0x10] sm:$0xff]  ;;  %v655_v6 = vld [vmem:[#allocation7] ss:$0 sm:$0xff] }
  0x4c   :  { %395 = vmatprep.subr.mxu0 %v202_v41  ;;  %325 = vmatpush1.msra.mxu1 %v199_v42  ;;  %v267_v5 = vld [vmem:[#allocation8 + $0x370] sm:$0xff]  ;;  %v266_v11 = vld [vmem:[#allocation8 + $0x368] sm:$0xff]  ;;  %v268_v12 = vld [vmem:[#allocation8 + $0x378] sm:$0xff] }
  0x4d   :  { %396 = vmatpush1.msra.mxu0 %v201_v43  ;;  %326 = vmatprep.subr.mxu1 %v193_v44  ;;  %v260_v13 = vld [vmem:[#allocation8 + $0x338] sm:$0xff]  ;;  %v259_v14 = vld [vmem:[#allocation8 + $0x330] sm:$0xff]  ;;  %v261_v15 = vld [vmem:[#allocation8 + $0x340] sm:$0xff] }
  0x4e   :  { %397 = vmatprep.subr.mxu0 %v195_v45  ;;  %327 = vmatpush1.msra.mxu1 %v192_v46  ;;  %v253_v16 = vld [vmem:[#allocation8 + $0x300] sm:$0xff]  ;;  %v252_v17 = vld [vmem:[#allocation8 + $0x2f8] sm:$0xff]  ;;  %v254_v18 = vld [vmem:[#allocation8 + $0x308] sm:$0xff] }
  0x4f   :  { %398 = vmatpush1.msra.mxu0 %v194_v47  ;;  %328 = vmatprep.subr.mxu1 %v186_v48  ;;  %v246_v19 = vld [vmem:[#allocation8 + $0x2c8] sm:$0xff]  ;;  %v245_v20 = vld [vmem:[#allocation8 + $0x2c0] sm:$0xff]  ;;  %v247_v21 = vld [vmem:[#allocation8 + $0x2d0] sm:$0xff] }
  0x50   :  { %399 = vmatprep.subr.mxu0 %v188_v49  ;;  %329 = vmatpush1.msra.mxu1 %v185_v50  ;;  %v239_v22 = vld [vmem:[#allocation8 + $0x290] sm:$0xff]  ;;  %v238_v23 = vld [vmem:[#allocation8 + $0x288] sm:$0xff]  ;;  %v240_v24 = vld [vmem:[#allocation8 + $0x298] sm:$0xff] }
  0x51   :  { %400 = vmatpush1.msra.mxu0 %v187_v51  ;;  %330 = vmatprep.subr.mxu1 %v179_v52  ;;  %v232_v25 = vld [vmem:[#allocation8 + $0x258] sm:$0xff]  ;;  %v231_v26 = vld [vmem:[#allocation8 + $0x250] sm:$0xff]  ;;  %v233_v27 = vld [vmem:[#allocation8 + $0x260] sm:$0xff] }
  0x52   :  { %401 = vmatprep.subr.mxu0 %v181_v53  ;;  %331 = vmatpush1.msra.mxu1 %v178_v54  ;;  %v225_v28 = vld [vmem:[#allocation8 + $0x220] sm:$0xff]  ;;  %v224_v29 = vld [vmem:[#allocation8 + $0x218] sm:$0xff]  ;;  %v226_v30 = vld [vmem:[#allocation8 + $0x228] sm:$0xff] }
  0x53   :  { %402 = vmatpush1.msra.mxu0 %v180_v55  ;;  %332 = vmatprep.subr.mxu1 %v172_v56  ;;  %v218_v31 = vld [vmem:[#allocation8 + $0x1e8] sm:$0xff]  ;;  %v217_v32 = vld [vmem:[#allocation8 + $0x1e0] sm:$0xff]  ;;  %v219_v33 = vld [vmem:[#allocation8 + $0x1f0] sm:$0xff] }
  0x54   :  { %403 = vmatprep.subr.mxu0 %v174_v57  ;;  %333 = vmatpush1.msra.mxu1 %v171_v58  ;;  %v211_v34 = vld [vmem:[#allocation8 + $0x1b0] sm:$0xff]  ;;  %v210_v35 = vld [vmem:[#allocation8 + $0x1a8] sm:$0xff]  ;;  %v212_v36 = vld [vmem:[#allocation8 + $0x1b8] sm:$0xff]  ;;  %v271_v58 = vlaneseq }
  0x55   :  { %404 = vmatpush1.msra.mxu0 %v173_v59  ;;  %441 = vmatprep.mubr.f32.mxu0 %v881_v0  ;;  %v204_v37 = vld [vmem:[#allocation8 + $0x178] sm:$0xff]  ;;  %v203_v38 = vld [vmem:[#allocation8 + $0x170] sm:$0xff]  ;;  %v205_v39 = vld [vmem:[#allocation8 + $0x180] sm:$0xff] }
  0x56   :  { %334 = vmatprep.subr.mxu1 %v165_v60  ;;  %405 = vmatprep.subr.mxu0 %v167_v61  ;;  %v197_v40 = vld [vmem:[#allocation8 + $0x140] sm:$0xff]  ;;  %v196_v41 = vld [vmem:[#allocation8 + $0x138] sm:$0xff]  ;;  %v198_v42 = vld [vmem:[#allocation8 + $0x148] sm:$0xff]  ;;  %v272_v59 = vshrl.u32 %v271_v58, 7 }
  0x57   :  { %335 = vmatpush1.msra.mxu1 %v164_v62  ;;  %406 = vmatpush1.msra.mxu0 %v166_v63  ;;  %v190_v43 = vld [vmem:[#allocation8 + $0x108] sm:$0xff]  ;;  %v189_v44 = vld [vmem:[#allocation8 + $0x100] sm:$0xff]  ;;  %v191_v45 = vld [vmem:[#allocation8 + $0x110] sm:$0xff] }
  0x58   :  { %336 = vmatprep.subr.mxu1 %v158_v1  ;;  %407 = vmatprep.subr.mxu0 %v160_v2  ;;  %v183_v46 = vld [vmem:[#allocation8 + $0xd0] sm:$0xff]  ;;  %v182_v47 = vld [vmem:[#allocation8 + $0xc8] sm:$0xff]  ;;  %v184_v48 = vld [vmem:[#allocation8 + $0xd8] sm:$0xff]  ;;  %v273_v60 = vsub.s32 0, %v272_v59  ;;  %v281_v61 = vsub.s32 2, %v272_v59  ;;  %v277_v63 = vsub.s32 1, %v272_v59 }
  0x59   :  { %337 = vmatpush1.msra.mxu1 %v157_v3  ;;  %408 = vmatpush1.msra.mxu0 %v159_v4  ;;  %v176_v49 = vld [vmem:[#allocation8 + $0x98] sm:$0xff]  ;;  %v175_v50 = vld [vmem:[#allocation8 + $0x90] sm:$0xff]  ;;  %v177_v51 = vld [vmem:[#allocation8 + $0xa0] sm:$0xff]  ;;  %v285_v1 = vsub.s32 3, %v272_v59 }
  0x5a   :  { %448 = vmatprep.subr.mxu1 %v267_v5  ;;  %691 = vmatprep.subr.mxu0 %v881_v0  ;;  %v169_v52 = vld [vmem:[#allocation8 + $0x60] sm:$0xff]  ;;  %v168_v53 = vld [vmem:[#allocation8 + $0x58] sm:$0xff]  ;;  %v170_v54 = vld [vmem:[#allocation8 + $0x68] sm:$0xff] }
  0x5b   :  { %v162_v55 = vld [vmem:[#allocation8 + $0x28] sm:$0xff]  ;;  %v161_v56 = vld [vmem:[#allocation8 + $0x20] sm:$0xff]  ;;  %v163_v57 = vld [vmem:[#allocation8 + $0x30] sm:$0xff] }
  0x5c   :  { %v269_v62 = vld [vmem:[%s967_s4] sm:$0xff]  ;;  %s883_s4 = smov [#allocation10]  }
  0x5d   :  { %v274_v2 = vrot.slane %v269_v62, %v273_v60  ;;  %v282_v3 = vrot.slane %v269_v62, %v281_v61  ;;  %v278_v4 = vrot.slane %v269_v62, %v277_v63  ;;  %v286_v5 = vrot.slane %v269_v62, %v285_v1  ;;  %s644_s16 = sshll.u32 %s883_s4, 4  ;;  %s645_s16 = int_to_ptr.vmem [resolvable:$true] %s644_s16 }
  0x5e   :  { %s845_s17 = scalar_lea.vmem %s645_s16, 896  ;;  %p850_p7 = scmp.lt.s32.totalorder %s645_s16, %s645_s16 }
  0x5f   :  { %p846_p6 = scmp.ne.s32.totalorder %s645_s16, %s845_s17  ;;  %p851_p8 = scmp.lt.s32.totalorder %s845_s17, %s845_s17 }
  0x61   :  { %p852_p9 = por %p851_p8, %p850_p7 }
  0x63   :  { %p853_p10 = pnand %p852_p9, %p846_p6 }
  0xfa   :  { %v152_v7 = vpop.f32.mrf.mxu0 }
  0xfb   :  { %v153_v8 = vadd.f32 %v655_v6, %v152_v7 }
  0xfc   :  { %v690_v9 = vpop.f32.mrf.mxu0 }
  0xfd   :  { %v933_v10 = vmax.f32 %v153_v8, 0.0 }
  0xff   :  { %371 = vmatmul.mubr.f32.vlgmr.msra.gmra.mxu1 %v933_v10  ;;  %442 = vmatmul.mubr.f32.vlgmr.msra.gmra.mxu0 %v933_v10 }
 0x100   :  { %449 = vmatpush1.msra.mxu1 %v266_v11  ;;  %692 = vmatpush3.msra.mxu0 %v268_v12 }
 0x101   :  { %450 = vmatprep.subr.mxu1 %v260_v13  ;;  %693 = vmatprep.subr.mxu0 %v881_v0 }
 0x102   :  { %451 = vmatpush1.msra.mxu1 %v259_v14  ;;  %694 = vmatpush3.msra.mxu0 %v261_v15 }
 0x103   :  { %452 = vmatprep.subr.mxu1 %v253_v16  ;;  %695 = vmatprep.subr.mxu0 %v881_v0 }
 0x104   :  { %453 = vmatpush1.msra.mxu1 %v252_v17  ;;  %696 = vmatpush3.msra.mxu0 %v254_v18 }
 0x105   :  { %454 = vmatprep.subr.mxu1 %v246_v19  ;;  %697 = vmatprep.subr.mxu0 %v881_v0 }
 0x106   :  { %455 = vmatpush1.msra.mxu1 %v245_v20  ;;  %698 = vmatpush3.msra.mxu0 %v247_v21 }
 0x107   :  { %456 = vmatprep.subr.mxu1 %v239_v22  ;;  %699 = vmatprep.subr.mxu0 %v881_v0 }
 0x108   :  { %457 = vmatpush1.msra.mxu1 %v238_v23  ;;  %700 = vmatpush3.msra.mxu0 %v240_v24 }
 0x109   :  { %458 = vmatprep.subr.mxu1 %v232_v25  ;;  %701 = vmatprep.subr.mxu0 %v881_v0  ;;  %v289_v25 = vsub.s32 4, %v272_v59 }
 0x10a   :  { %459 = vmatpush1.msra.mxu1 %v231_v26  ;;  %702 = vmatpush3.msra.mxu0 %v233_v27  ;;  %v297_v26 = vsub.s32 6, %v272_v59  ;;  %v293_v27 = vsub.s32 5, %v272_v59 }
 0x10b   :  { %460 = vmatprep.subr.mxu1 %v225_v28  ;;  %703 = vmatprep.subr.mxu0 %v881_v0  ;;  %v290_v28 = vrot.slane %v269_v62, %v289_v25 }
 0x10c   :  { %461 = vmatpush1.msra.mxu1 %v224_v29  ;;  %704 = vmatpush3.msra.mxu0 %v226_v30  ;;  %v298_v29 = vrot.slane %v269_v62, %v297_v26  ;;  %v294_v30 = vrot.slane %v269_v62, %v293_v27 }
 0x10d   :  { %462 = vmatprep.subr.mxu1 %v218_v31  ;;  %705 = vmatprep.subr.mxu0 %v881_v0 }
 0x10e   :  { %463 = vmatpush1.msra.mxu1 %v217_v32  ;;  %706 = vmatpush3.msra.mxu0 %v219_v33 }
 0x10f   :  { %464 = vmatprep.subr.mxu1 %v211_v34  ;;  %707 = vmatprep.subr.mxu0 %v881_v0 }
 0x110   :  { %465 = vmatpush1.msra.mxu1 %v210_v35  ;;  %708 = vmatpush3.msra.mxu0 %v212_v36 }
 0x111   :  { %466 = vmatprep.subr.mxu1 %v204_v37  ;;  %709 = vmatprep.subr.mxu0 %v881_v0 }
 0x112   :  { %467 = vmatpush1.msra.mxu1 %v203_v38  ;;  %710 = vmatpush3.msra.mxu0 %v205_v39 }
 0x113   :  { %468 = vmatprep.subr.mxu1 %v197_v40  ;;  %711 = vmatprep.subr.mxu0 %v881_v0 }
 0x114   :  { %469 = vmatpush1.msra.mxu1 %v196_v41  ;;  %712 = vmatpush3.msra.mxu0 %v198_v42 }
 0x115   :  { %470 = vmatprep.subr.mxu1 %v190_v43  ;;  %713 = vmatprep.subr.mxu0 %v881_v0 }
 0x116   :  { %471 = vmatpush1.msra.mxu1 %v189_v44  ;;  %714 = vmatpush3.msra.mxu0 %v191_v45 }
 0x117   :  { %472 = vmatprep.subr.mxu1 %v183_v46  ;;  %715 = vmatprep.subr.mxu0 %v881_v0 }
 0x118   :  { %473 = vmatpush1.msra.mxu1 %v182_v47  ;;  %716 = vmatpush3.msra.mxu0 %v184_v48 }
 0x119   :  { %474 = vmatprep.subr.mxu1 %v176_v49  ;;  %717 = vmatprep.subr.mxu0 %v881_v0 }
 0x11a   :  { %475 = vmatpush1.msra.mxu1 %v175_v50  ;;  %718 = vmatpush3.msra.mxu0 %v177_v51 }
 0x11b   :  { %476 = vmatprep.subr.mxu1 %v169_v52  ;;  %719 = vmatprep.subr.mxu0 %v881_v0 }
 0x11c   :  { %477 = vmatpush1.msra.mxu1 %v168_v53  ;;  %720 = vmatpush3.msra.mxu0 %v170_v54 }
 0x11d   :  { %478 = vmatprep.subr.mxu1 %v162_v55  ;;  %721 = vmatprep.subr.mxu0 %v881_v0 }
 0x11e   :  { %479 = vmatpush1.msra.mxu1 %v161_v56  ;;  %512 = vmatprep.mubr.f32.mxu1 %v881_v0 }
 0x11f   :  { %722 = vmatpush3.msra.mxu0 %v163_v57  ;;  %723 = vmatprep.mubr.msk.f32.mxu0 %vm882_vm0, %v881_v0 }
 0x120   :  { %513 = vmatmul.mubr.f32.vlgmr.msra.gmra.mxu1 %v933_v10  ;;  %724 = vmatmul.mubr.f32.vlgmr.msra.gmra.mxu0 %v933_v10 }
 0x1bf   :  { %v372_v6 = vpop.f32.mrf.mxu1  ;;  %v443_v0 = vpop.f32.mrf.mxu0 }
 0x1c0   :  { %v373_v7 = vadd.f32 %v372_v6, %v274_v2  ;;  %v444_v8 = vadd.f32 %v443_v0, %v282_v3 }
 0x1c1   :  { %v374_v9 = vpop.f32.mrf.mxu1  ;;  %v445_v10 = vpop.f32.mrf.mxu0 }
 0x1c2   :  { %v657_v11 = vmul.f32 -1.442695, %v373_v7  ;;  %v659_v12 = vmul.f32 -1.442695, %v444_v8  ;;  %v375_v13 = vadd.f32 %v374_v9, %v278_v4  ;;  %v446_v14 = vadd.f32 %v445_v10, %v286_v5 }
 0x1c4   :  { %737 = vpow2.f32 %v657_v11  ;;  %v658_v15 = vmul.f32 -1.442695, %v375_v13  ;;  %v660_v16 = vmul.f32 -1.442695, %v446_v14 }
 0x1c5   :  { %739 = vpow2.f32 %v659_v12 }
 0x1c6   :  { %741 = vpow2.f32 %v658_v15 }
 0x1c7   :  { %743 = vpow2.f32 %v660_v16 }
 0x1d1   :  { %v738_v17 = vpop.eup %737 }
 0x1d2   :  { %v740_v18 = vpop.eup %739  ;;  %v610_v19 = vadd.f32 1.0, %v738_v17 }
 0x1d3   :  { %v742_v20 = vpop.eup %741  ;;  %v612_v21 = vadd.f32 1.0, %v740_v18 }
 0x1d4   :  { %v744_v22 = vpop.eup %743  ;;  %745 = vrcp.f32 %v610_v19  ;;  %v611_v23 = vadd.f32 1.0, %v742_v20 }
 0x1d5   :  { %747 = vrcp.f32 %v612_v21  ;;  %v613_v24 = vadd.f32 1.0, %v744_v22 }
 0x1d6   :  { %749 = vrcp.f32 %v611_v23 }
 0x1d7   :  { %751 = vrcp.f32 %v613_v24 }
 0x1e0   :  { %v514_v31 = vpop.f32.mrf.mxu1  ;;  %v585_v32 = vpop.f32.mrf.mxu0 }
 0x1e1   :  { %v746_v33 = vpop.eup %745  ;;  %v515_v34 = vadd.f32 %v514_v31, %v290_v28  ;;  %v586_v35 = vadd.f32 %v585_v32, %v298_v29 }
 0x1e2   :  { %v748_v36 = vpop.eup %747  ;;  %631 = vst [vmem:[#allocation10] sm:$0xff] %v746_v33  ;;  %v516_v37 = vpop.f32.mrf.mxu1 }
 0x1e3   :  { %v725_v38 = vpop.f32.mrf.mxu0  ;;  %v750_v39 = vpop.eup %749  ;;  %633 = vst [vmem:[#allocation10 + $0x10] sm:$0xff] %v748_v36  ;;  %v661_v40 = vmul.f32 -1.442695, %v515_v34  ;;  %v663_v41 = vmul.f32 -1.442695, %v586_v35  ;;  %v517_v42 = vadd.f32 %v516_v37, %v294_v30 }
 0x1e4   :  { %v752_v43 = vpop.eup %751  ;;  %632 = vst [vmem:[#allocation10 + $0x8] sm:$0xff] %v750_v39 }
 0x1e5   :  { %634 = vst [vmem:[#allocation10 + $0x18] sm:$0xff] %v752_v43  ;;  %753 = vpow2.f32 %v661_v40  ;;  %v662_v44 = vmul.f32 -1.442695, %v517_v42 }
 0x1e6   :  { %755 = vpow2.f32 %v663_v41 }
 0x1e7   :  { %757 = vpow2.f32 %v662_v44 }
 0x1f2   :  { %v754_v45 = vpop.eup %753 }
 0x1f3   :  { %v756_v46 = vpop.eup %755  ;;  %v614_v47 = vadd.f32 1.0, %v754_v45 }
 0x1f4   :  { %v758_v48 = vpop.eup %757  ;;  %v616_v49 = vadd.f32 1.0, %v756_v46 }
 0x1f5   :  { %759 = vrcp.f32 %v614_v47  ;;  %v615_v50 = vadd.f32 1.0, %v758_v48 }
 0x1f6   :  { %761 = vrcp.f32 %v616_v49 }
 0x1f7   :  { %763 = vrcp.f32 %v615_v50 }
 0x202   :  { %v760_v51 = vpop.eup %759 }
 0x203   :  { %v762_v52 = vpop.eup %761  ;;  %635 = vst [vmem:[#allocation10 + $0x20] sm:$0xff] %v760_v51 }
 0x204   :  { %v764_v53 = vpop.eup %763  ;;  %637 = vst [vmem:[#allocation10 + $0x30] sm:$0xff] %v762_v52 }
 0x205   :  { %636 = vst [vmem:[#allocation10 + $0x28] sm:$0xff] %v764_v53 }
 0x206   :  { %856 = shalt.err (!%p853_p10)
}
 0x207   :  { %647 = dma.vmem_to_hbm [thread:$0]  %s645_s16, 896, %s968_s5, [#allocation4]  }
 0x208   :  { %871 = dma.done.wait [#allocation4], 896  }
 0x209   :  { %872 = vsyncadd [#allocation4], 4294966400 }
 0x20a   :  { %651 = vsyncpa [#allocation3], 1 }
 0x20b   :  { %652 = vsyncpa [#allocation6], 1 }
 0x20c   :  { %653 = vsyncpa [#allocation9], 1 }
 0x20d   :  { %654 = vsyncpa [#allocation4], 1 }

</bundles_post_ra>
